<compile_context>
chip_gen: v6e
topology: v6e:2x2x1
jax: 0.10.0
libtpu: 0.0.40
codegen_flags: <defaults>
</compile_context>

<pallas_src>
import functools

import jax
import jax.numpy as jnp
from jax.experimental import pallas as pl
from jax.experimental.pallas import tpu as pltpu


def _ce2d_kernel(x_ref, t_ref, w_ref, num_ref, den_ref, ch_ref, *,
                 ignore_index, hw, tile, cps, need_col_mask):
    s = pl.program_id(1)          # parallel pixel-half (megacore split)
    j = pl.program_id(2)          # accumulation axis (pixel chunks)

    @pl.when(j == 0)
    def _():
        num_ref[...] = jnp.zeros_like(num_ref)
        den_ref[...] = jnp.zeros_like(den_ref)
        # hoisted channel iota (refilled once per (n, s); persists across j)
        ch_ref[...] = jax.lax.broadcasted_iota(jnp.int32, ch_ref.shape, 0)

    x = x_ref[...]                              # (C, T) logits, native dtype
    t = t_ref[...]                              # (1, T) int32 targets
    w = w_ref[...]                              # (C, 1) f32 class weights

    # log-softmax over the channel (sublane) axis; single full-width f32 temp.
    m = jnp.max(x, axis=0, keepdims=True)                        # (1, T)
    z = (x - m).astype(jnp.float32)                              # (C, T) f32
    lse = jnp.log(jnp.sum(jnp.exp(z), axis=0, keepdims=True))    # (1, T)

    # one-hot select of target class (no float one-hot temp)
    sel = ch_ref[...] == t                                       # (C, T) bool
    picked_z = jnp.sum(jnp.where(sel, z, 0.0), axis=0, keepdims=True)  # (1, T)
    w_pix = jnp.sum(jnp.where(sel, w, 0.0), axis=0, keepdims=True)     # (1, T)
    nll = lse - picked_z                                               # (1, T)

    valid = t != ignore_index
    if need_col_mask:            # static: only when tail/padded chunks exist
        blk = s * cps + j        # unclamped logical chunk index
        col = jax.lax.broadcasted_iota(jnp.int32, (1, tile), 1) + blk * tile
        valid = valid & (col < hw)

    # SELECTS (not multiply-by-0) so tail-column inf/NaN never pollutes sums.
    num_ref[...] += jnp.where(valid, w_pix * nll, 0.0)
    den_ref[...] += jnp.where(valid, w_pix, 0.0)


def _vmem_plan():
    """Generation-aware (budget_for_tiling, vmem_limit_bytes)."""
    try:
        cap = int(pltpu.get_tpu_info().vmem_capacity_bytes)
    except Exception:
        cap = 64 << 20                      # conservative: v7x per-TC capacity
    vmem_limit = max(32 << 20, min(cap - (16 << 20), 100 << 20))
    budget = min(int(vmem_limit * 0.7), 64 << 20)
    return budget, vmem_limit


def _pick_tile(hw, c, itemsize, budget):
    """Largest lane tile (multiple of 128) whose working set fits `budget`:
    2x double-buffered logits+targets blocks, int32 iota scratch, ~4 full-width
    f32 body temporaries, plus the (1, T) vectors / accumulator slabs."""
    if hw <= 128:
        return hw
    hw_cap = (hw // 128) * 128
    per_lane = c * (2 * int(itemsize) + 4 + 16) + 64
    t = (budget // per_lane // 128) * 128
    t = min(t, hw_cap, 64 * 1024)
    return max(t, 128)


def cross_entropy_loss_2d(logits_nchw, targets_nhw, weight=None,
                          ignore_index=-100, tile=None):
    """Equivalent of CrossEntropyLoss2d(weight).forward(logits, targets).

    logits_nchw: (N, C, H, W) float;  targets_nhw: (N, H, W) int;
    weight: (C,) float or None.  Returns scalar weighted mean over
    non-ignored pixels (size_average=True).

    Targets outside [0, C) other than ignore_index contribute zero to both
    numerator and denominator (PyTorch would raise).  All-ignored -> NaN
    (matches PyTorch).
    """
    N, C, H, W = logits_nchw.shape
    HW = H * W

    # Free, contiguous reshapes only — no transpose / pad of the big tensor.
    x = logits_nchw.reshape(N, C, HW)
    t = targets_nhw.reshape(N, 1, HW).astype(jnp.int32)
    if weight is None:
        w = jnp.ones((1, C, 1), jnp.float32)
    else:
        w = jnp.asarray(weight, jnp.float32).reshape(1, C, 1)

    budget, vmem_limit = _vmem_plan()
    if tile is None:
        tile = _pick_tile(HW, C, jnp.dtype(logits_nchw.dtype).itemsize, budget)

    n_chunks = pl.cdiv(HW, tile)
    n_splits = 2 if n_chunks >= 2 else 1          # 2-way megacore work (v7x)
    cps = pl.cdiv(n_chunks, n_splits)             # chunks per half
    need_col_mask = (HW % tile != 0) or (n_splits * cps != n_chunks)
    last_blk = n_chunks - 1

    def chunk_idx(s_i, j_i):
        # clamp padded logical chunks onto the last real block (masked in-kernel)
        return jnp.minimum(s_i * cps + j_i, last_blk)

    kernel = functools.partial(_ce2d_kernel, ignore_index=ignore_index,
                               hw=HW, tile=tile, cps=cps,
                               need_col_mask=need_col_mask)

    num, den = pl.pallas_call(
        kernel,
        out_shape=(jax.ShapeDtypeStruct((N, n_splits, 1, tile), jnp.float32),
                   jax.ShapeDtypeStruct((N, n_splits, 1, tile), jnp.float32)),
        grid=(N, n_splits, cps),
        in_specs=[
            pl.BlockSpec((pl.Squeezed(), C, tile),
                         lambda n, s, j: (n, 0, chunk_idx(s, j))),   # logits
            pl.BlockSpec((pl.Squeezed(), 1, tile),
                         lambda n, s, j: (n, 0, chunk_idx(s, j))),   # targets
            pl.BlockSpec((pl.Squeezed(), C, 1),
                         lambda n, s, j: (0, 0, 0)),                 # weights
        ],
        out_specs=(
            pl.BlockSpec((pl.Squeezed(), pl.Squeezed(), 1, tile),
                         lambda n, s, j: (n, s, 0, 0)),              # num
            pl.BlockSpec((pl.Squeezed(), pl.Squeezed(), 1, tile),
                         lambda n, s, j: (n, s, 0, 0)),              # den
        ),
        scratch_shapes=[pltpu.VMEM((C, tile), jnp.int32)],           # chan iota
        compiler_params=pltpu.CompilerParams(
            dimension_semantics=("parallel", "parallel", "arbitrary"),
            vmem_limit_bytes=int(vmem_limit)),
    )(x, t, w)

    total_num = jnp.sum(num)
    total_den = jnp.sum(den)
    # size_average=True -> weighted mean over non-ignored pixels
    return (total_num / total_den).astype(logits_nchw.dtype)


def _reference_loss(logits_nchw, targets_nhw, weight, ignore_index=-100):
    """Pure-JAX reference matching F.log_softmax(dim=1) + nn.NLLLoss2d."""
    N, C, H, W = logits_nchw.shape
    logp = jax.nn.log_softmax(logits_nchw.astype(jnp.float32), axis=1)
    logp = jnp.transpose(logp, (0, 2, 3, 1)).reshape(-1, C)          # (P, C)
    t = targets_nhw.reshape(-1).astype(jnp.int32)                    # (P,)
    valid = (t != ignore_index)
    t_safe = jnp.where(valid, t, 0)
    picked = jnp.take_along_axis(logp, t_safe[:, None], axis=1)[:, 0]
    w_pix = weight[t_safe]
    num = jnp.sum(jnp.where(valid, -w_pix * picked, 0.0))
    den = jnp.sum(jnp.where(valid, w_pix, 0.0))
    return num / den


if __name__ == "__main__":
    key = jax.random.PRNGKey(0)
    k1, k2, k3, k4, k5, k6 = jax.random.split(key, 6)

    # --- Test 1: weighted, single full tile --------------------------------
    N, C, H, W = 2, 4, 16, 16
    logits = jax.random.normal(k1, (N, C, H, W), jnp.float32)
    targets = jax.random.randint(k2, (N, H, W), 0, C).astype(jnp.int32)
    targets = targets.at[0, 0, :4].set(-100)          # exercise ignore_index
    weight = 1.0 + 0.1 * jnp.arange(C, dtype=jnp.float32)

    loss = jax.block_until_ready(cross_entropy_loss_2d(logits, targets,
                                                       weight=weight))
    ref = _reference_loss(logits, targets, weight)
    assert jnp.allclose(loss, ref, rtol=1e-5, atol=1e-5), (loss, ref)

    # --- Test 2: unweighted, HW not a multiple of 128 (tail mask + split) --
    N2, C2, H2, W2 = 2, 5, 16, 10
    logits2 = jax.random.normal(k3, (N2, C2, H2, W2), jnp.float32)
    targets2 = jax.random.randint(k4, (N2, H2, W2), 0, C2).astype(jnp.int32)
    targets2 = targets2.at[1, 3, :5].set(-100)

    loss2 = jax.block_until_ready(cross_entropy_loss_2d(logits2, targets2))
    ref2 = _reference_loss(logits2, targets2, jnp.ones((C2,), jnp.float32))
    assert jnp.allclose(loss2, ref2, rtol=1e-5, atol=1e-5), (loss2, ref2)

    # --- Test 3: forced small tile -> multi-chunk accumulation + megacore
    #     split with an odd chunk count (exercises clamped padded chunk). ----
    N3, C3, H3, W3 = 1, 4, 16, 24                      # HW = 384, tile = 128
    logits3 = jax.random.normal(k5, (N3, C3, H3, W3), jnp.float32)
    targets3 = jax.random.randint(k6, (N3, H3, W3), 0, C3).astype(jnp.int32)
    targets3 = targets3.at[0, 2, :7].set(-100)
    weight3 = 0.5 + 0.25 * jnp.arange(C3, dtype=jnp.float32)

    loss3 = jax.block_until_ready(cross_entropy_loss_2d(
        logits3, targets3, weight=weight3, tile=128))
    ref3 = _reference_loss(logits3, targets3, weight3)
    assert jnp.allclose(loss3, ref3, rtol=1e-5, atol=1e-5), (loss3, ref3)

    print("KERNEL_OK")
</pallas_src>

<mosaic_0001>
module attributes {stable_mosaic.version = 11 : i64} {
  func.func @_ce2d_kernel(%arg0: i32, %arg1: i32, %arg2: i32, %arg3: memref<1x4x256xf32, #tpu.memory_space<vmem>>, %arg4: memref<1x1x256xi32, #tpu.memory_space<vmem>>, %arg5: memref<1x4x1xf32, #tpu.memory_space<vmem>>, %arg6: memref<1x1x1x256xf32, #tpu.memory_space<vmem>>, %arg7: memref<1x1x1x256xf32, #tpu.memory_space<vmem>>, %arg8: memref<4x256xi32, #tpu.memory_space<vmem>>) attributes {dimension_semantics = [#tpu.dimension_semantics<parallel>, #tpu.dimension_semantics<parallel>, #tpu.dimension_semantics<arbitrary>], iteration_bounds = array<i64: 2, 1, 1>, scalar_prefetch = 0 : i64, scratch_operands = 1 : i64, tpu.core_type = #tpu.core_type<tc>, window_params = [{transform_indices = @transform_0, window_bounds = array<i64: 1, 4, 256>}, {transform_indices = @transform_1, window_bounds = array<i64: 1, 1, 256>}, {pipeline_mode = #tpu.pipeline_mode<synchronous>, transform_indices = @transform_2, window_bounds = array<i64: 1, 4, 1>}, {transform_indices = @transform_3, window_bounds = array<i64: 1, 1, 1, 256>}, {transform_indices = @transform_4, window_bounds = array<i64: 1, 1, 1, 256>}]} {
    %c0_i32 = arith.constant 0 : i32
    %0 = arith.cmpi eq, %arg2, %c0_i32 : i32
    %1 = arith.extui %0 : i1 to i32
    %c0_i32_0 = arith.constant 0 : i32
    %2 = arith.cmpi ne, %1, %c0_i32_0 : i32
    scf.if %2 {
      %cst_34 = arith.constant 0.000000e+00 : f32
      %50 = vector.broadcast %cst_34 : f32 to vector<1x256xf32>
      %c0_35 = arith.constant 0 : index
      %c0_36 = arith.constant 0 : index
      %c0_37 = arith.constant 0 : index
      %c0_38 = arith.constant 0 : index
      %51 = vector.load %arg6[%c0_35, %c0_36, %c0_37, %c0_38] : memref<1x1x1x256xf32, #tpu.memory_space<vmem>>, vector<1x1x1x256xf32>
      %52 = vector.shape_cast %51 : vector<1x1x1x256xf32> to vector<1x256xf32>
      %53 = vector.shape_cast %50 : vector<1x256xf32> to vector<1x1x1x256xf32>
      tpu.vector_store %arg6[%c0_35, %c0_36, %c0_37, %c0_38], %53 {strides = array<i32>} : memref<1x1x1x256xf32, #tpu.memory_space<vmem>>, vector<1x1x1x256xf32>,
      %cst_39 = arith.constant 0.000000e+00 : f32
      %54 = vector.broadcast %cst_39 : f32 to vector<1x256xf32>
      %c0_40 = arith.constant 0 : index
      %c0_41 = arith.constant 0 : index
      %c0_42 = arith.constant 0 : index
      %c0_43 = arith.constant 0 : index
      %55 = vector.load %arg7[%c0_40, %c0_41, %c0_42, %c0_43] : memref<1x1x1x256xf32, #tpu.memory_space<vmem>>, vector<1x1x1x256xf32>
      %56 = vector.shape_cast %55 : vector<1x1x1x256xf32> to vector<1x256xf32>
      %57 = vector.shape_cast %54 : vector<1x256xf32> to vector<1x1x1x256xf32>
      tpu.vector_store %arg7[%c0_40, %c0_41, %c0_42, %c0_43], %57 {strides = array<i32>} : memref<1x1x1x256xf32, #tpu.memory_space<vmem>>, vector<1x1x1x256xf32>,
      %58 = tpu.iota {dimensions = array<i32: 0>} : vector<4x256xi32>
      %c0_44 = arith.constant 0 : index
      %c0_45 = arith.constant 0 : index
      %59 = vector.load %arg8[%c0_44, %c0_45] : memref<4x256xi32, #tpu.memory_space<vmem>>, vector<4x256xi32>
      tpu.vector_store %arg8[%c0_44, %c0_45], %58 {strides = array<i32>} : memref<4x256xi32, #tpu.memory_space<vmem>>, vector<4x256xi32>,
    } else {
    }
    %c0 = arith.constant 0 : index
    %c0_1 = arith.constant 0 : index
    %c0_2 = arith.constant 0 : index
    %3 = vector.load %arg3[%c0, %c0_1, %c0_2] : memref<1x4x256xf32, #tpu.memory_space<vmem>>, vector<1x4x256xf32>
    %4 = vector.shape_cast %3 : vector<1x4x256xf32> to vector<4x256xf32>
    %c0_3 = arith.constant 0 : index
    %c0_4 = arith.constant 0 : index
    %c0_5 = arith.constant 0 : index
    %5 = vector.load %arg4[%c0_3, %c0_4, %c0_5] : memref<1x1x256xi32, #tpu.memory_space<vmem>>, vector<1x1x256xi32>
    %6 = vector.shape_cast %5 : vector<1x1x256xi32> to vector<1x256xi32>
    %c0_6 = arith.constant 0 : index
    %c0_7 = arith.constant 0 : index
    %c0_8 = arith.constant 0 : index
    %7 = vector.load %arg5[%c0_6, %c0_7, %c0_8] : memref<1x4x1xf32, #tpu.memory_space<vmem>>, vector<1x4x1xf32>
    %8 = vector.shape_cast %7 : vector<1x4x1xf32> to vector<4x1xf32>
    %cst = arith.constant dense<0xFF800000> : vector<256xf32>
    %9 = vector.multi_reduction <maximumf>, %4, %cst [0] : vector<4x256xf32> to vector<256xf32>
    %10 = vector.shape_cast %9 : vector<256xf32> to vector<1x256xf32>
    %11 = vector.broadcast %10 : vector<1x256xf32> to vector<4x256xf32>
    %12 = arith.subf %4, %11 : vector<4x256xf32>
    %13 = math.exp %12 : vector<4x256xf32>
    %cst_9 = arith.constant dense<0.000000e+00> : vector<256xf32>
    %14 = vector.multi_reduction <add>, %13, %cst_9 [0] : vector<4x256xf32> to vector<256xf32>
    %15 = vector.shape_cast %14 : vector<256xf32> to vector<1x256xf32>
    %16 = math.log %15 : vector<1x256xf32>
    %c0_10 = arith.constant 0 : index
    %c0_11 = arith.constant 0 : index
    %17 = vector.load %arg8[%c0_10, %c0_11] : memref<4x256xi32, #tpu.memory_space<vmem>>, vector<4x256xi32>
    %18 = vector.broadcast %6 : vector<1x256xi32> to vector<4x256xi32>
    %19 = arith.cmpi eq, %17, %18 : vector<4x256xi32>
    %cst_12 = arith.constant 0.000000e+00 : f32
    %20 = vector.broadcast %cst_12 : f32 to vector<4x256xf32>
    %21 = arith.select %19, %12, %20 : vector<4x256xi1>, vector<4x256xf32>
    %cst_13 = arith.constant dense<0.000000e+00> : vector<256xf32>
    %22 = vector.multi_reduction <add>, %21, %cst_13 [0] : vector<4x256xf32> to vector<256xf32>
    %23 = vector.shape_cast %22 : vector<256xf32> to vector<1x256xf32>
    %cst_14 = arith.constant 0.000000e+00 : f32
    %24 = vector.shape_cast %8 : vector<4x1xf32> to vector<4x1xf32>
    %25 = vector.broadcast %24 : vector<4x1xf32> to vector<4x256xf32>
    %26 = vector.broadcast %cst_14 : f32 to vector<4x256xf32>
    %27 = arith.select %19, %25, %26 : vector<4x256xi1>, vector<4x256xf32>
    %cst_15 = arith.constant dense<0.000000e+00> : vector<256xf32>
    %28 = vector.multi_reduction <add>, %27, %cst_15 [0] : vector<4x256xf32> to vector<256xf32>
    %29 = vector.shape_cast %28 : vector<256xf32> to vector<1x256xf32>
    %30 = arith.subf %16, %23 : vector<1x256xf32>
    %c-100_i32 = arith.constant -100 : i32
    %31 = vector.broadcast %c-100_i32 : i32 to vector<1x256xi32>
    %32 = arith.cmpi ne, %6, %31 : vector<1x256xi32>
    %c0_16 = arith.constant 0 : index
    %c0_17 = arith.constant 0 : index
    %c0_18 = arith.constant 0 : index
    %c0_19 = arith.constant 0 : index
    %33 = vector.load %arg6[%c0_16, %c0_17, %c0_18, %c0_19] : memref<1x1x1x256xf32, #tpu.memory_space<vmem>>, vector<1x1x1x256xf32>
    %34 = vector.shape_cast %33 : vector<1x1x1x256xf32> to vector<1x256xf32>
    %35 = arith.mulf %29, %30 : vector<1x256xf32>
    %cst_20 = arith.constant 0.000000e+00 : f32
    %36 = vector.broadcast %cst_20 : f32 to vector<1x256xf32>
    %37 = arith.select %32, %35, %36 : vector<1x256xi1>, vector<1x256xf32>
    %38 = arith.addf %34, %37 : vector<1x256xf32>
    %c0_21 = arith.constant 0 : index
    %c0_22 = arith.constant 0 : index
    %c0_23 = arith.constant 0 : index
    %c0_24 = arith.constant 0 : index
    %39 = vector.load %arg6[%c0_21, %c0_22, %c0_23, %c0_24] : memref<1x1x1x256xf32, #tpu.memory_space<vmem>>, vector<1x1x1x256xf32>
    %40 = vector.shape_cast %39 : vector<1x1x1x256xf32> to vector<1x256xf32>
    %41 = vector.shape_cast %38 : vector<1x256xf32> to vector<1x1x1x256xf32>
    tpu.vector_store %arg6[%c0_21, %c0_22, %c0_23, %c0_24], %41 {strides = array<i32>} : memref<1x1x1x256xf32, #tpu.memory_space<vmem>>, vector<1x1x1x256xf32>,
    %c0_25 = arith.constant 0 : index
    %c0_26 = arith.constant 0 : index
    %c0_27 = arith.constant 0 : index
    %c0_28 = arith.constant 0 : index
    %42 = vector.load %arg7[%c0_25, %c0_26, %c0_27, %c0_28] : memref<1x1x1x256xf32, #tpu.memory_space<vmem>>, vector<1x1x1x256xf32>
    %43 = vector.shape_cast %42 : vector<1x1x1x256xf32> to vector<1x256xf32>
    %cst_29 = arith.constant 0.000000e+00 : f32
    %44 = vector.broadcast %cst_29 : f32 to vector<1x256xf32>
    %45 = arith.select %32, %29, %44 : vector<1x256xi1>, vector<1x256xf32>
    %46 = arith.addf %43, %45 : vector<1x256xf32>
    %c0_30 = arith.constant 0 : index
    %c0_31 = arith.constant 0 : index
    %c0_32 = arith.constant 0 : index
    %c0_33 = arith.constant 0 : index
    %47 = vector.load %arg7[%c0_30, %c0_31, %c0_32, %c0_33] : memref<1x1x1x256xf32, #tpu.memory_space<vmem>>, vector<1x1x1x256xf32>
    %48 = vector.shape_cast %47 : vector<1x1x1x256xf32> to vector<1x256xf32>
    %49 = vector.shape_cast %46 : vector<1x256xf32> to vector<1x1x1x256xf32>
    tpu.vector_store %arg7[%c0_30, %c0_31, %c0_32, %c0_33], %49 {strides = array<i32>} : memref<1x1x1x256xf32, #tpu.memory_space<vmem>>, vector<1x1x1x256xf32>,
    return
  }
  func.func @transform_0(%arg0: i32, %arg1: i32, %arg2: i32) -> (i32, i32, i32) {
    %c1_i32 = arith.constant 1 : i32
    %0 = arith.muli %arg1, %c1_i32 : i32
    %1 = arith.addi %0, %arg2 : i32
    %c0_i32 = arith.constant 0 : i32
    %2 = arith.minsi %1, %c0_i32 : i32
    %c0_i32_0 = arith.constant 0 : i32
    %c0_i32_1 = arith.constant 0 : i32
    return %arg0, %c0_i32_0, %2 : i32, i32, i32
  }
  func.func @transform_1(%arg0: i32, %arg1: i32, %arg2: i32) -> (i32, i32, i32) {
    %c1_i32 = arith.constant 1 : i32
    %0 = arith.muli %arg1, %c1_i32 : i32
    %1 = arith.addi %0, %arg2 : i32
    %c0_i32 = arith.constant 0 : i32
    %2 = arith.minsi %1, %c0_i32 : i32
    %c0_i32_0 = arith.constant 0 : i32
    %c0_i32_1 = arith.constant 0 : i32
    return %arg0, %c0_i32_0, %2 : i32, i32, i32
  }
  func.func @transform_2(%arg0: i32, %arg1: i32, %arg2: i32) -> (i32, i32, i32) {
    %c0_i32 = arith.constant 0 : i32
    %c0_i32_0 = arith.constant 0 : i32
    %c0_i32_1 = arith.constant 0 : i32
    %c0_i32_2 = arith.constant 0 : i32
    return %c0_i32, %c0_i32_0, %c0_i32_1 : i32, i32, i32
  }
  func.func @transform_3(%arg0: i32, %arg1: i32, %arg2: i32) -> (i32, i32, i32, i32) {
    %c0_i32 = arith.constant 0 : i32
    %c0_i32_0 = arith.constant 0 : i32
    %c0_i32_1 = arith.constant 0 : i32
    return %arg0, %arg1, %c0_i32, %c0_i32_0 : i32, i32, i32, i32
  }
  func.func @transform_4(%arg0: i32, %arg1: i32, %arg2: i32) -> (i32, i32, i32, i32) {
    %c0_i32 = arith.constant 0 : i32
    %c0_i32_0 = arith.constant 0 : i32
    %c0_i32_1 = arith.constant 0 : i32
    return %arg0, %arg1, %c0_i32, %c0_i32_0 : i32, i32, i32, i32
  }
}

</mosaic_0001>

<bundles_post_ra>
// kernel: tpu_custom_call.1
= control target key start
LH: loop header
LB: loop body
LE: loop exit
PB: predicated region body
PF: predicated region fallthrough
CT: control target
= control target key end

     0   :  { %10 = vsyncpa [#allocation4], 0  ;;  %s1184_s0 = inlined_call_operand.hbm [shape: f32[2,4,256], index: 0, kind: input, shape index: {}]   ;;  %s1185_s1 = inlined_call_operand.vmem [shape: s32[2,1,256], index: 1, kind: input, shape index: {}]   ;;  %s1186_s2 = inlined_call_operand.vmem [shape: f32[1,4,1], index: 2, kind: input, shape index: {}]   ;;  %s1187_s3 = inlined_call_operand.hbm [shape: f32[2,1,1,256], index: 3, kind: output, shape index: {0}]   ;;  %s1188_s4 = inlined_call_operand.hbm [shape: f32[2,1,1,256], index: 4, kind: output, shape index: {1}]  }
   0x1   :  { %12 = vsyncpa [#allocation4 + $0x1], 0 }
   0x2   :  { %13 = vsyncpa [#allocation5], 0 }
   0x3   :  { %15 = vsyncpa [#allocation5 + $0x1], 0 }
   0x4   :  { %16 = vsyncpa [#allocation8], 0 }
   0x5   :  { %18 = vsyncpa [#allocation8 + $0x1], 0  ;;  %s949_s15 = smov 0   ;;  %s951_s16 = smov 0  }
   0x6   :  { %s953_s17 = smov 0   ;;  %s955_s18 = smov 0  }
   0x7   :  { %s957_s19 = smov 0   ;;  %s959_s20 = smov 0  }
   0x8 LB: > { %s675_s21 = sadd.s32 4294967295, %s915_s20   ;;  %s676_s22 = sadd.s32 4294967294, %s915_s20   ;;  %s915_s20 = sphi %s959_s20, %s24_s20   ;;  %s911_s19 = sphi %s957_s19, %s1204_s19   ;;  %s907_s18 = sphi %s955_s18, %s1203_s18   ;;  %s903_s17 = sphi %s953_s17, %s1202_s17   ;;  %s899_s16 = sphi %s951_s16, %s1201_s16   ;;  %s895_s15 = sphi %s949_s15, %s1200_s15  }
   0x9   : > { %s43_s23 = sadd.s32 1, %s911_s19  ;;  %s58_s24 = sadd.s32 1, %s903_s17 }
   0xa   : > { %p45_p0 = scmp.ge.s32.totalorder %s43_s23, 2  ;;  %p65_p1 = scmp.ne.s32.totalorder %s903_s17, %s899_s16 }
   0xb   : > { %p66_p2 = scmp.eq.s32.totalorder %s915_s20, 0  ;;  %p71_p3 = scmp.ne.s32.totalorder %s899_s16, %s895_s15 }
   0xc   : > { %s1206_s23 = smov (%p45_p0, %s43_s23), 0  ;;  %p72_p5 = scmp.eq.s32.totalorder %s675_s21, 0 }
   0xd   : > { %p990_p4 = por %p66_p2, %p65_p1  ;;  %s53_s26 = ssub.s32 %s911_s19, %s1206_s23 }
   0xe   : > { %p152_p6 = scmp.eq.s32.totalorder %s675_s21, 1  ;;  %p56_p7 = scmp.eq.s32.totalorder %s53_s26, 0 }
   0xf   : > { %p996_p8 = por %p72_p5, %p71_p3  ;;  %p158_p10 = scmp.eq.s32.totalorder %s676_s22, 1 }
  0x10   : > { %p1000_p9 = por %p152_p6, %p65_p1  ;;  %p715_p13 = scmp.lt.s32.totalorder %s915_s20, 2 }
  0x11   : > { %s1005_s29 = scalar_select %p56_p7, %s903_s17, %s58_s24  }
  0x12   : > { %p1007_p11 = por %p158_p10, %p71_p3  ;;  %s209_s5 = sand.u32 1, %s903_s17  }
  0x13   : > { %s679_s6 = sshll.u32 %s209_s5, 3  ;;  %s695_s7 = sshll.u32 %s911_s19, 7 }
  0x14   : > { %s1192_s30 = scalar_select %p1007_p11, 1, 0 }
  0x15   : > { %s224_s10 = scalar_lea.hbm %s1184_s0, %s695_s7  ;;  %s213_s11 = scalar_lea.vmem [#allocation3], %s679_s6 }
  0x16   : > { %s226_s12 = sshll.u32 %s213_s11, 4  ;;  %p1020_p0 = pnand %p715_p13, %p990_p4  ;;  %s227_s12 = int_to_ptr.vmem [resolvable:$true] %s226_s12 }
  0x17   : > { %p682_p1 = scmp.ge.s32.totalorder %s915_s20, 1  ;;  %p249_p2 = scmp.lt.s32.totalorder %s915_s20, 3 }
  0x18   : > { %s210_s14 = scalar_lea.sflag [#allocation4], %s209_s5  ;;  %p779_p3 = pneg %p1020_p0 }
  0x19   : > { %s790_s21 = scalar_lea.vmem %s227_s12, 128  ;;  %s917_s22 = smov [#allocation3]  }
  0x1a   : > { %p791_p5 = scmp.ne.s32.totalorder %s227_s12, %s790_s21  ;;  %s795_s24 = sshll.u32 %s917_s22, 4  ;;  %s796_s24 = int_to_ptr.vmem [resolvable:$false] %s795_s24 }
  0x1b   : > { %s797_s26 = scalar_lea.vmem %s796_s24, 256  ;;  %p798_p10 = scmp.lt.s32.totalorder %s227_s12, %s796_s24 }
  0x1c   : > { %p793_p6 = pnand %p791_p5, %p779_p3  ;;  %p799_p12 = scmp.lt.s32.totalorder %s797_s26, %s790_s21 }
  0x1e   : > { %p794_p7 = pneg %p793_p6  ;;  %p800_p4 = por %p799_p12, %p798_p10 }
  0x20   : > { %p801_p13 = pnand %p800_p4, %p794_p7 }
  0x22   : > { %804 = shalt.err (!%p801_p13)
}
  0x23   : > { %707 = dma.hbm_to_vmem [thread:$0]  (!%p1020_p0), %s224_s10, 128, %s227_s12, %s210_s14  }
  0x24   : > { %p250_p11 = pnand %p682_p1, %p249_p2 }
  0x25   : > { %s1035_s25 = sand.u32 (!%p250_p11), 1, %s899_s16  }
  0x26   : > { %253 = sbr.rel (%p250_p11) target bundleno = 232 (0xe8), region = 32  ;;  %s683_s5 = sshll.u32 (!%p250_p11), %s1035_s25, 3 }
  0x27   : > { %s256_s6 = scalar_lea.sflag (!%p250_p11), [#allocation4], %s1035_s25  ;;  %s259_s7 = scalar_lea.vmem (!%p250_p11), [#allocation3], %s683_s5 }
  0x2b   : > { %882 = dma.done.wait (%p996_p8), %s256_s6, 128  }
  0x2c   : > { %884 = vsyncadd (%p996_p8), %s256_s6, 4294967168  ;;  %v918_v0 = vmov 0   ;;  %v341_v1 = vld [vmem:[%s1186_s2] sm:$0xf]  ;;  %v323_v2 = vlaneseq  ;;  %s684_s10 = sshll.u32 %s1035_s25, 1  ;;  %v919_v4 = vmov 0.0  }
  0x2d   : > { %769 = vset.pattern.permute.xlu0 %v918_v0  ;;  %s1051_s11 = scalar_lea.vmem [#allocation7], %s684_s10  ;;  %s1056_s27 = scalar_lea.vmem [#allocation6], %s684_s10  ;;  %v339_v5 = vld [vmem:[%s259_s7] sm:$0xff]  ;;  %vm345_vm1 = vcmask 1043456   ;;  %v920_v26 = vmov 839922192  }
  0x2e   : > { %419 = vperm.xlu0 %769, %v341_v1   ;;  %vm1047_vm0 = vcmp.lt.s32.totalorder %v323_v2, 256  ;;  %v343_v6 = vcombine.high %v339_v5, %v339_v5  ;;  %v346_v7 = vsel %vm345_vm1, %v339_v5, -inf  ;;  %p308_p8 = scmp.lt.s32.totalorder %s907_s18, 1  ;;  %v1065_v25 = vshrl.u32 %v323_v2, 7  ;;  %s696_s24 = sshll.u32 %s907_s18, 5 }
  0x2f   : > { %328 = vst.msk [vmem:[%s1051_s11] sm:$0x3] %vm1047_vm0, %v919_v4  ;;  %327 = vst.msk [vmem:[%s1056_s27] sm:$0x3] %vm1047_vm0, %v919_v4  ;;  %v347_v9 = vrot.slane %v346_v7, 4  ;;  %v332_v27 = vunpack.c.l.s4 %v920_v26  ;;  %s538_s26 = sshll.u32 %s1051_s11, 4  ;;  %s1102_s8 = scalar_lea.hbm %s1188_s4, %s696_s24  ;;  %s1104_s26 = int_to_ptr.vmem [resolvable:$true] %s538_s26 }
  0x30   : > { %v353_v8 = vsel %vm345_vm1, %v343_v6, -inf  ;;  %s309_s12 = scalar_select %p308_p8, %s907_s18, 1  ;;  %v391_v30 = vsub.s32 0, %v1065_v25  ;;  %v395_v31 = vsub.s32 1, %v1065_v25 }
  0x31   : > { %v354_v10 = vrot.slane %v353_v8, 4  ;;  %v348_v11 = vmax.f32 %v346_v7, %v347_v9  ;;  %v333_v29 = vunpack.c.0.s8 %v332_v27  ;;  %s522_s5 = sshll.u32 %s1056_s27, 4  ;;  %s1109_s10 = scalar_lea.hbm %s1187_s3, %s696_s24  ;;  %s1111_s5 = int_to_ptr.vmem [resolvable:$true] %s522_s5 }
  0x32   : > { %s686_s13 = sshll.u32 %s309_s12, 1  ;;  %s506_s12 = scalar_lea.sflag [#allocation8], %s1035_s25 }
  0x33   : > { %v355_v12 = vmax.f32 %v353_v8, %v354_v10  ;;  %v349_v13 = vrot.slane %v348_v11, 2  ;;  %s314_s22 = scalar_lea.vmem %s1185_s1, %s686_s13  ;;  %v336_v35 = vsub.s32 %v333_v29, %v1065_v25  ;;  %s805_s13 = scalar_lea.vmem %s1104_s26, 32 }
  0x34   : > { %v1072_v32 = vld [vmem:[%s314_s22] sm:$0x3]  ;;  %p806_p11 = scmp.ne.s32.totalorder %s1104_s26, %s805_s13  ;;  %s922_s14 = smov [#allocation7]  }
  0x35   : > { %v356_v14 = vrot.slane %v355_v12, 2  ;;  %v350_v15 = vmax.f32 %v348_v11, %v349_v13  ;;  %v392_v36 = vrot.slane %v1072_v32, %v391_v30  ;;  %v396_v37 = vrot.slane %v1072_v32, %v395_v31  ;;  %s809_s21 = sshll.u32 %s922_s14, 4  ;;  %s810_s21 = int_to_ptr.vmem [resolvable:$false] %s809_s21 }
  0x36   : > { %v337_v40 = vrot.slane %v1065_v25, %v336_v35  ;;  %vm449_vm3 = vcmp.ne.s32.totalorder %v1072_v32, 4294967196  ;;  %p807_p12 = pnand %p806_p11, %p1000_p9  ;;  %s811_s22 = scalar_lea.vmem %s810_s21, 64 }
  0x37   : > { %v357_v16 = vmax.f32 %v355_v12, %v356_v14  ;;  %v351_v17 = vrot.slane %v350_v15, 1  ;;  %v397_v41 = vcombine.low %v392_v36, %v396_v37  ;;  %p812_p1 = scmp.lt.s32.totalorder %s1104_s26, %s810_s21  ;;  %p813_p2 = scmp.lt.s32.totalorder %s811_s22, %s805_s13 }
  0x38   : > { %p808_p0 = pneg %p807_p12 }
  0x39   : > { %v358_v18 = vrot.slane %v357_v16, 1  ;;  %v352_v19 = vmax.f32 %v350_v15, %v351_v17  ;;  %vm1080_vm2 = vcmp.eq.s32.totalorder %v337_v40, %v397_v41  ;;  %v921_v15 = vmov 1966171168   ;;  %p814_p3 = por %p813_p2, %p812_p1 }
  0x3b   : > { %v359_v20 = vmax.f32 %v357_v16, %v358_v18  ;;  %v457_v16 = vunpack.c.l.s4 %v921_v15  ;;  %p815_p5 = pnand %p814_p3, %p808_p0 }
  0x3d   : > { %v362_v21 = vcombine.low %v352_v19, %v359_v20  ;;  %v458_v26 = vunpack.c.0.s8 %v457_v16 }
  0x3f   : > { %v364_v22 = vsub.f32 %v339_v5, %v362_v21 }
  0x41   : > { %v365_v23 = vmul.f32 1.442695, %v364_v22  ;;  %v399_v47 = vsel %vm1080_vm2, %v364_v22, 0.0 }
  0x42   : > { %v401_v50 = vcombine.high %v399_v47, %v399_v47  ;;  %v403_v53 = vsel %vm345_vm1, %v399_v47, 0.0 }
  0x43   : > { %771 = vpow2.f32 %v365_v23  ;;  %v404_v56 = vrot.slane %v403_v53, 4 }
  0x44   : > { %v410_v54 = vsel %vm345_vm1, %v401_v50, 0.0 }
  0x45   : > { %v411_v57 = vrot.slane %v410_v54, 4  ;;  %v405_v59 = vadd.f32 %v404_v56, %v403_v53 }
  0x47   : > { %v412_v60 = vadd.f32 %v411_v57, %v410_v54  ;;  %v406_v61 = vrot.slane %v405_v59, 2 }
  0x49   : > { %v413_v62 = vrot.slane %v412_v60, 2  ;;  %v407_v1 = vadd.f32 %v406_v61, %v405_v59 }
  0x4b   : > { %v414_v2 = vadd.f32 %v413_v62, %v412_v60  ;;  %v408_v8 = vrot.slane %v407_v1, 1 }
  0x4d   : > { %v415_v9 = vrot.slane %v414_v2, 1  ;;  %v409_v19 = vadd.f32 %v408_v8, %v407_v1 }
  0x4f   : > { %v416_v20 = vadd.f32 %v415_v9, %v414_v2 }
  0x50   : > { %v772_v24 = vpop.eup %771 }
  0x51   : > { %v368_v28 = vcombine.high %v772_v24, %v772_v24  ;;  %v370_v33 = vsel %vm345_vm1, %v772_v24, 0.0 }
  0x52   : > { %v371_v38 = vrot.slane %v370_v33, 4 }
  0x53   : > { %v377_v34 = vsel %vm345_vm1, %v368_v28, 0.0 }
  0x54   : > { %v378_v39 = vrot.slane %v377_v34, 4  ;;  %v372_v42 = vadd.f32 %v371_v38, %v370_v33 }
  0x56   : > { %v379_v43 = vadd.f32 %v378_v39, %v377_v34  ;;  %v373_v45 = vrot.slane %v372_v42, 2  ;;  %v461_v34 = vsub.s32 %v458_v26, %v1065_v25  ;;  %v450_v25 = vld [vmem:[%s1056_s27] sm:$0x3] }
  0x58   : > { %v380_v46 = vrot.slane %v379_v43, 2  ;;  %v374_v48 = vadd.f32 %v373_v45, %v372_v42 }
  0x5a   : > { %v381_v49 = vadd.f32 %v380_v46, %v379_v43  ;;  %v375_v51 = vrot.slane %v374_v48, 1  ;;  %v478_v43 = vld [vmem:[%s1051_s11] sm:$0x3] }
  0x5c   : > { %v382_v52 = vrot.slane %v381_v49, 1  ;;  %v376_v55 = vadd.f32 %v375_v51, %v374_v48 }
  0x5e   : > { %v383_v58 = vadd.f32 %v382_v52, %v381_v49  ;;  %773 = vlog2.f32 %v376_v55 }
  0x60   : > { %775 = vlog2.f32 %v383_v58 }
  0x6b   : > { %v774_v11 = vpop.eup %773 }
  0x6c   : > { %v385_v21 = vmul.f32 0.6931472, %v774_v11 }
  0x6d   : > { %v776_v14 = vpop.eup %775 }
  0x6e   : > { %v387_v22 = vmul.f32 0.6931472, %v776_v14  ;;  %v447_v31 = vsub.f32 %v385_v21, %v409_v19 }
  0x70   : > { %v448_v33 = vsub.f32 %v387_v22, %v416_v20 }
  0xa9   : > { %v420_v63 = vpop.permute.xlu0 %419 }
  0xaa   : > { %v427_v0 = vrot.slane %v420_v63, %v336_v35 }
  0xac   : > { %v429_v4 = vsel %vm1080_vm2, %v427_v0, 0.0 }
  0xad   : > { %v431_v5 = vcombine.high %v429_v4, %v429_v4  ;;  %v433_v6 = vsel %vm345_vm1, %v429_v4, 0.0 }
  0xae   : > { %v434_v7 = vrot.slane %v433_v6, 4 }
  0xaf   : > { %v440_v10 = vsel %vm345_vm1, %v431_v5, 0.0 }
  0xb0   : > { %v435_v12 = vadd.f32 %v434_v7, %v433_v6  ;;  %v441_v13 = vrot.slane %v440_v10, 4 }
  0xb2   : > { %v436_v17 = vrot.slane %v435_v12, 2  ;;  %v442_v18 = vadd.f32 %v441_v13, %v440_v10 }
  0xb4   : > { %v437_v23 = vadd.f32 %v436_v17, %v435_v12  ;;  %v443_v24 = vrot.slane %v442_v18, 2 }
  0xb6   : > { %v438_v27 = vrot.slane %v437_v23, 1  ;;  %v444_v28 = vadd.f32 %v443_v24, %v442_v18 }
  0xb8   : > { %v439_v29 = vadd.f32 %v438_v27, %v437_v23  ;;  %v445_v30 = vrot.slane %v444_v28, 1 }
  0xba   : > { %v446_v35 = vadd.f32 %v445_v30, %v444_v28  ;;  %v451_v36 = vmul.f32 %v447_v31, %v439_v29 }
  0xbc   : > { %v452_v37 = vmul.f32 %v448_v33, %v446_v35  ;;  %v481_v38 = vcombine.low %v439_v29, %v446_v35 }
  0xbe   : > { %v455_v39 = vcombine.low %v451_v36, %v452_v37  ;;  %v488_v40 = vrot.slane %v481_v38, %v461_v34 }
  0xc0   : > { %v462_v41 = vrot.slane %v455_v39, %v461_v34  ;;  %v495_v42 = vrot.slane %v488_v40, %v461_v34 }
  0xc2   : > { %v469_v44 = vrot.slane %v462_v41, %v461_v34  ;;  %v497_v45 = vsel %vm449_vm3, %v495_v42, 0.0 }
  0xc3   : > { %v498_v46 = vadd.f32 %v497_v45, %v478_v43 }
  0xc4   : > { %v471_v32 = vsel %vm449_vm3, %v469_v44, 0.0 }
  0xc5   : > { %v472_v47 = vadd.f32 %v471_v32, %v450_v25  ;;  %499 = vst.msk [vmem:[%s1051_s11] sm:$0x3] %vm1047_vm0, %v498_v46 }
  0xc6   : > { %818 = shalt.err (!%p815_p5)
}
  0xc7   : > { %s819_s11 = scalar_lea.hbm %s1102_s8, 32  ;;  %s823_s7 = scalar_lea.hbm %s1188_s4, 64 }
  0xc8   : > { %p820_p6 = scmp.ne.s32.totalorder %s1102_s8, %s819_s11  ;;  %p824_p4 = scmp.lt.s32.totalorder %s1102_s8, %s1188_s4 }
  0xc9   : > { %p825_p13 = scmp.lt.s32.totalorder %s823_s7, %s819_s11 }
  0xca   : > { %p821_p7 = pnand %p820_p6, %p1000_p9 }
  0xcb   : > { %p826_p8 = por %p825_p13, %p824_p4 }
  0xcc   : > { %p822_p10 = pneg %p821_p7 }
  0xce   : > { %p827_p11 = pnand %p826_p8, %p822_p10 }
  0xd0   : > { %830 = shalt.err (!%p827_p11)
}
  0xd1   : > { %701 = dma.vmem_to_hbm [thread:$0]  (%p1000_p9), %s1104_s26, 32, %s1102_s8, %s506_s12   ;;  %477 = vst.msk [vmem:[%s1056_s27] sm:$0x3] %vm1047_vm0, %v472_v47 }
  0xd2   : > { %s501_s13 = scalar_lea.sflag [#allocation5], %s1035_s25  ;;  %s831_s14 = scalar_lea.vmem %s1111_s5, 32 }
  0xd3   : > { %p832_p12 = scmp.ne.s32.totalorder %s1111_s5, %s831_s14  ;;  %s923_s21 = smov [#allocation6]  }
  0xd4   : > { %s835_s22 = sshll.u32 %s923_s21, 4  ;;  %s836_s22 = int_to_ptr.vmem [resolvable:$false] %s835_s22 }
  0xd5   : > { %p833_p0 = pnand %p832_p12, %p1000_p9  ;;  %s837_s11 = scalar_lea.vmem %s836_s22, 64 }
  0xd6   : > { %p838_p2 = scmp.lt.s32.totalorder %s1111_s5, %s836_s22  ;;  %p839_p3 = scmp.lt.s32.totalorder %s837_s11, %s831_s14 }
  0xd7   : > { %p834_p1 = pneg %p833_p0 }
  0xd8   : > { %p840_p5 = por %p839_p3, %p838_p2 }
  0xda   : > { %p841_p6 = pnand %p840_p5, %p834_p1 }
  0xdc   : > { %844 = shalt.err (!%p841_p6)
}
  0xdd   : > { %s845_s27 = scalar_lea.hbm %s1109_s10, 32  ;;  %s849_s8 = scalar_lea.hbm %s1187_s3, 64 }
  0xde   : > { %p846_p7 = scmp.ne.s32.totalorder %s1109_s10, %s845_s27  ;;  %p850_p13 = scmp.lt.s32.totalorder %s1109_s10, %s1187_s3 }
  0xdf   : > { %p851_p8 = scmp.lt.s32.totalorder %s849_s8, %s845_s27 }
  0xe0   : > { %p847_p10 = pnand %p846_p7, %p1000_p9 }
  0xe1   : > { %p852_p11 = por %p851_p8, %p850_p13 }
  0xe2   : > { %p848_p4 = pneg %p847_p10 }
  0xe4   : > { %p853_p12 = pnand %p852_p11, %p848_p4 }
  0xe6   : > { %856 = shalt.err (!%p853_p12)
}
  0xe7   : > { %700 = dma.vmem_to_hbm [thread:$0]  (%p1000_p9), %s1111_s5, 32, %s1109_s10, %s501_s13  }
  0xe8 PF: > { %s550_s6 = sand.u32 1, %s895_s15   ;;  %p1198_p0 = scmp.ne.s32.totalorder %s1192_s30, 0 }
  0xe9   : > { %p1199_p1 = scmp.ge.s32.totalorder %s915_s20, 2  ;;  %s551_s7 = scalar_lea.sflag [#allocation5], %s550_s6 }
  0xeb   : > { %p709_p2 = pnand %p1199_p1, %p1198_p0 }
  0xed   : > { %p710_p3 = pneg %p709_p2 }
  0xef   : > { %886 = dma.done.wait (%p710_p3), %s551_s7, 32  }
  0xf0   : > { %888 = vsyncadd (%p710_p3), %s551_s7, 4294967264  ;;  %s560_s18 = scalar_lea.sflag [#allocation8], %s550_s6 }
  0xf1   : > { %890 = dma.done.wait (%p710_p3), %s560_s18, 32  }
  0xf2   : > { %892 = vsyncadd (%p710_p3), %s560_s18, 4294967264  ;;  %s24_s20 = sadd.s32 1, %s915_s20   ;;  %s1200_s15 = smov %s899_s16 }
  0xf3   : > { %p21_p5 = scmp.ge.s32.totalorder %s24_s20, 4   ;;  %s1201_s16 = smov %s903_s17 }
  0xf4   : > { %s1202_s17 = smov %s1005_s29  ;;  %s1203_s18 = smov %s911_s19 }
  0xf5   : > { %s1204_s19 = smov %s1206_s23  ;;  %23 = sbr.rel (!%p21_p5) target bundleno = 8 (0x8), region = 101 }
  0xfa   :  { %565 = vsyncpa [#allocation4], 1 }
  0xfb   :  { %567 = vsyncpa [#allocation4 + $0x1], 1 }
  0xfc   :  { %568 = vsyncpa [#allocation5], 1 }
  0xfd   :  { %570 = vsyncpa [#allocation5 + $0x1], 1 }
  0xfe   :  { %571 = vsyncpa [#allocation8], 1 }
  0xff   :  { %573 = vsyncpa [#allocation8 + $0x1], 1 }

</bundles_post_ra>
